<compile_context>
chip_gen: v7x
topology: tpu7x:2x2x1
jax: 0.10.0
libtpu: 0.0.40
codegen_flags: <defaults>
</compile_context>

<pallas_src>
import functools

import jax
import jax.numpy as jnp
from jax.experimental import pallas as pl
from jax.experimental.pallas import tpu as pltpu

POSRELU_OFFSET = 1e-7
LANE = 128


def _round_up(a, b):
    return (a + b - 1) // b * b


def _cdiv(a, b):
    return (a + b - 1) // b


def _pos_relu(p):
    # PosReLU: relu(p - offset) + offset   (pow_protection='posrelu')
    return jnp.maximum(p - POSRELU_OFFSET, 0.0) + POSRELU_OFFSET


def _lpp_sum_kernel(norm_ref, x_ref, o_ref, acc_ref, *, hw_len, hw_tile,
                    needs_mask):
    """Grid = (row_blocks, hw_blocks); hw axis is the reduction ('arbitrary').

    norm_ref : (1,) f32 SMEM             -- learnable norm_type parameter
    x_ref    : (row_tile, hw_tile) VMEM  -- activation tile (f32 or bf16)
    o_ref    : (row_tile, 1) f32 VMEM    -- raw row sums, written on last k only
    acc_ref  : (row_tile, LANE) f32 VMEM scratch -- lane-dense running sum
    """
    k = pl.program_id(1)
    exp = _pos_relu(norm_ref[0])
    # Default-init fast path: exp == 2.0 exactly -> VALU x*x instead of the
    # EUP-bound exp(exp*log(x)) lowering of jnp.power.
    use_square = exp == jnp.float32(2.0)

    @pl.when(k == 0)
    def _init():
        acc_ref[...] = jnp.zeros_like(acc_ref)

    x = x_ref[...].astype(jnp.float32)

    if needs_mask:
        # Only the spatial-tail block has invalid lanes; on all other blocks
        # valid >= hw_tile so the select is an all-true no-op (cheap VALU
        # filler under the pow).
        valid = hw_len - k * hw_tile
        lane_idx = jax.lax.broadcasted_iota(jnp.int32, x.shape, 1)
        mask = lane_idx < valid
    else:
        mask = None

    def _accumulate(xp):
        if mask is not None:
            xp = jnp.where(mask, xp, 0.0)   # select: garbage/NaN tail -> 0
        # Lane-dense fold: pure VALU vreg adds on 128-lane aligned slices; the
        # cross-lane XLU reduce is deferred to the once-per-row-block finalize.
        partial = xp[:, :LANE]
        for j in range(1, hw_tile // LANE):
            partial = partial + xp[:, j * LANE:(j + 1) * LANE]
        acc_ref[...] += partial

    @pl.when(use_square)
    def _fast():
        _accumulate(x * x)

    @pl.when(jnp.logical_not(use_square))
    def _generic():
        _accumulate(jnp.power(x, exp))       # torch.pow(input, exp)

    @pl.when(k == pl.num_programs(1) - 1)
    def _finalize():
        o_ref[...] = jnp.sum(acc_ref[...], axis=-1, keepdims=True)


def adalearn_lpp3(x, norm_type, *, target_tile_bytes=2 * 1024 * 1024,
                  max_hw_tile=2048, min_row_blocks=8):
    """Global learned-Lp pooling. x: (N, C, H, W) float; returns (N, C, 1, 1)."""
    N, C, H, W = x.shape
    NC, HW = N * C, H * W
    itemsize = x.dtype.itemsize
    sublane = {4: 8, 2: 16, 1: 32}.get(itemsize, 8)

    # --- skewed shapes: fold part of the spatial axis into the (parallel) row
    #     axis so tiny-NC / huge-HW inputs still get multiple row blocks
    #     (v7x megacore) and chunkier DMA blocks.  Pure metadata reshape; the
    #     `fold` partial sums are combined in the jnp epilogue. --------------
    fold = 1
    if NC < min_row_blocks * sublane and HW >= 2 * LANE:
        for cand in (8, 4, 2):
            if (NC * cand <= min_row_blocks * sublane and HW % cand == 0
                    and HW // cand >= LANE):
                fold = cand
                break
    rows, hw_len = NC * fold, HW // fold
    x2 = x.reshape(rows, hw_len)        # contiguous -> free metadata reshape

    # --- spatial (reduction) axis: lane-aligned blocks; NO host-side padding,
    #     the in-kernel mask covers the tail. --------------------------------
    num_hw_blocks = max(1, _cdiv(hw_len, max_hw_tile))
    hw_tile = _round_up(_cdiv(hw_len, num_hw_blocks), LANE)
    num_hw_blocks = _cdiv(hw_len, hw_tile)
    needs_mask = (hw_len % hw_tile) != 0

    # --- row (parallel) axis: fill ~target_tile_bytes per input block, but
    #     keep >= min_row_blocks grid steps when there is enough work. -------
    rows_budget = max(sublane,
                      (target_tile_bytes // (hw_tile * itemsize))
                      // sublane * sublane)
    row_cap = max(sublane, _round_up(_cdiv(rows, min_row_blocks), sublane))
    row_tile = min(rows_budget, row_cap)
    num_row_blocks = _cdiv(rows, row_tile)

    norm1 = jnp.asarray(norm_type, jnp.float32).reshape(1)
    kernel = functools.partial(_lpp_sum_kernel, hw_len=hw_len, hw_tile=hw_tile,
                               needs_mask=needs_mask)

    sums = pl.pallas_call(
        kernel,
        out_shape=jax.ShapeDtypeStruct((rows, 1), jnp.float32),
        grid=(num_row_blocks, num_hw_blocks),
        in_specs=[
            pl.BlockSpec(memory_space=pltpu.SMEM),                   # norm_type
            pl.BlockSpec((row_tile, hw_tile), lambda i, k: (i, k)),  # x tiles
        ],
        out_specs=pl.BlockSpec((row_tile, 1), lambda i, k: (i, 0)),
        scratch_shapes=[pltpu.VMEM((row_tile, LANE), jnp.float32)],
        compiler_params=pltpu.CompilerParams(
            dimension_semantics=("parallel", "arbitrary"),
            vmem_limit_bytes=32 * 1024 * 1024),
    )(norm1, x2)

    # --- tiny O(N*C) epilogue: combine fold partials, apply pow(., 1/exp). ---
    sums = sums[:, 0]
    if fold > 1:
        sums = sums.reshape(NC, fold).sum(axis=1)
    exp = _pos_relu(jnp.asarray(norm_type, jnp.float32))
    y = jnp.power(sums, 1.0 / exp).astype(x.dtype)
    return y.reshape(N, C, 1, 1)


def adalearn_lpp3_reference(x, norm_type):
    """Pure-JAX reference mirroring the PyTorch forward exactly."""
    exp = _pos_relu(norm_type)
    kwkh = x.shape[2] * x.shape[3]
    out = jnp.mean(jnp.power(x, exp), axis=(2, 3), keepdims=True)
    return jnp.power((jnp.sign(out) * jax.nn.relu(jnp.abs(out))) * kwkh,
                     1.0 / exp)


if __name__ == "__main__":
    key = jax.random.PRNGKey(0)
    k1, k2 = jax.random.split(key)

    # Case 1: default init (norm_type = 2.0) -> exercises the x*x fast path
    # and the spatial fold (NC=8, HW=256). Positive activations (typical
    # post-ReLU input) keep the elementwise pow well defined, matching torch.
    x1 = jax.random.uniform(k1, (2, 4, 16, 16), dtype=jnp.float32,
                            minval=0.05, maxval=1.0)
    p1 = jnp.asarray(2.0, dtype=jnp.float32)
    y1 = adalearn_lpp3(x1, p1)
    jax.block_until_ready(y1)
    y1_ref = adalearn_lpp3_reference(x1, p1)
    assert y1.shape == (2, 4, 1, 1)
    assert jnp.allclose(y1, y1_ref, rtol=1e-5, atol=1e-5), "case1 mismatch"

    # Case 2: non-default exponent + ragged spatial extent -> exercises the
    # generic exp(p*log x) path, the in-kernel spatial-tail mask, and partial
    # row blocks (no host-side padding anywhere).
    x2 = jax.random.uniform(k2, (2, 3, 7, 9), dtype=jnp.float32,
                            minval=0.05, maxval=1.0)
    p2 = jnp.asarray(3.0, dtype=jnp.float32)
    y2 = adalearn_lpp3(x2, p2)
    jax.block_until_ready(y2)
    y2_ref = adalearn_lpp3_reference(x2, p2)
    assert y2.shape == (2, 3, 1, 1)
    assert jnp.allclose(y2, y2_ref, rtol=1e-5, atol=1e-5), "case2 mismatch"

    print("KERNEL_OK")
</pallas_src>

<mosaic_0001>
module attributes {stable_mosaic.version = 11 : i64} {
  func.func @_lpp_sum_kernel(%arg0: i32, %arg1: i32, %arg2: memref<1xf32, #tpu.memory_space<smem>>, %arg3: memref<8x128xf32, #tpu.memory_space<vmem>>, %arg4: memref<8x1xf32, #tpu.memory_space<vmem>>, %arg5: memref<8x128xf32, #tpu.memory_space<vmem>>) attributes {dimension_semantics = [#tpu.dimension_semantics<parallel>, #tpu.dimension_semantics<arbitrary>], iteration_bounds = array<i64: 2, 1>, scalar_prefetch = 0 : i64, scratch_operands = 1 : i64, tpu.core_type = #tpu.core_type<tc>, window_params = [{transform_indices = @transform_0, window_bounds = array<i64: 1>}, {transform_indices = @transform_1, window_bounds = array<i64: 8, 128>}, {transform_indices = @transform_2, window_bounds = array<i64: 8, 1>}]} {
    %c0 = arith.constant 0 : index
    %0 = memref.load %arg2[%c0] : memref<1xf32, #tpu.memory_space<smem>>
    %cst = arith.constant 1.000000e-07 : f32
    %1 = arith.subf %0, %cst : f32
    %cst_0 = arith.constant 0.000000e+00 : f32
    %2 = arith.maximumf %1, %cst_0 : f32
    %cst_1 = arith.constant 1.000000e-07 : f32
    %3 = arith.addf %2, %cst_1 : f32
    %cst_2 = arith.constant 2.000000e+00 : f32
    %4 = arith.cmpf oeq, %3, %cst_2 : f32
    %c0_i32 = arith.constant 0 : i32
    %5 = arith.cmpi eq, %arg1, %c0_i32 : i32
    %6 = arith.extui %5 : i1 to i32
    %c0_i32_3 = arith.constant 0 : i32
    %7 = arith.cmpi ne, %6, %c0_i32_3 : i32
    scf.if %7 {
      %cst_10 = arith.constant 0.000000e+00 : f32
      %17 = vector.broadcast %cst_10 : f32 to vector<8x128xf32>
      %c0_11 = arith.constant 0 : index
      %c0_12 = arith.constant 0 : index
      %18 = vector.load %arg5[%c0_11, %c0_12] : memref<8x128xf32, #tpu.memory_space<vmem>>, vector<8x128xf32>
      tpu.vector_store %arg5[%c0_11, %c0_12], %17 {strides = array<i32>} : memref<8x128xf32, #tpu.memory_space<vmem>>, vector<8x128xf32>,
    } else {
    }
    %c0_4 = arith.constant 0 : index
    %c0_5 = arith.constant 0 : index
    %8 = vector.load %arg3[%c0_4, %c0_5] : memref<8x128xf32, #tpu.memory_space<vmem>>, vector<8x128xf32>
    %9 = arith.extui %4 : i1 to i32
    %c0_i32_6 = arith.constant 0 : i32
    %10 = arith.cmpi ne, %9, %c0_i32_6 : i32
    scf.if %10 {
      %17 = arith.mulf %8, %8 : vector<8x128xf32>
      %c0_10 = arith.constant 0 : index
      %c0_11 = arith.constant 0 : index
      %18 = vector.load %arg5[%c0_10, %c0_11] : memref<8x128xf32, #tpu.memory_space<vmem>>, vector<8x128xf32>
      %19 = arith.addf %18, %17 : vector<8x128xf32>
      %c0_12 = arith.constant 0 : index
      %c0_13 = arith.constant 0 : index
      %20 = vector.load %arg5[%c0_12, %c0_13] : memref<8x128xf32, #tpu.memory_space<vmem>>, vector<8x128xf32>
      tpu.vector_store %arg5[%c0_12, %c0_13], %19 {strides = array<i32>} : memref<8x128xf32, #tpu.memory_space<vmem>>, vector<8x128xf32>,
    } else {
    }
    %true = arith.constant true
    %11 = arith.xori %4, %true : i1
    %12 = arith.extui %11 : i1 to i32
    %c0_i32_7 = arith.constant 0 : i32
    %13 = arith.cmpi ne, %12, %c0_i32_7 : i32
    scf.if %13 {
      %17 = vector.broadcast %3 : f32 to vector<8x128xf32>
      %18 = math.powf %8, %17 : vector<8x128xf32>
      %c0_10 = arith.constant 0 : index
      %c0_11 = arith.constant 0 : index
      %19 = vector.load %arg5[%c0_10, %c0_11] : memref<8x128xf32, #tpu.memory_space<vmem>>, vector<8x128xf32>
      %20 = arith.addf %19, %18 : vector<8x128xf32>
      %c0_12 = arith.constant 0 : index
      %c0_13 = arith.constant 0 : index
      %21 = vector.load %arg5[%c0_12, %c0_13] : memref<8x128xf32, #tpu.memory_space<vmem>>, vector<8x128xf32>
      tpu.vector_store %arg5[%c0_12, %c0_13], %20 {strides = array<i32>} : memref<8x128xf32, #tpu.memory_space<vmem>>, vector<8x128xf32>,
    } else {
    }
    %c0_i32_8 = arith.constant 0 : i32
    %14 = arith.cmpi eq, %arg1, %c0_i32_8 : i32
    %15 = arith.extui %14 : i1 to i32
    %c0_i32_9 = arith.constant 0 : i32
    %16 = arith.cmpi ne, %15, %c0_i32_9 : i32
    scf.if %16 {
      %c0_10 = arith.constant 0 : index
      %c0_11 = arith.constant 0 : index
      %17 = vector.load %arg5[%c0_10, %c0_11] : memref<8x128xf32, #tpu.memory_space<vmem>>, vector<8x128xf32>
      %cst_12 = arith.constant dense<0.000000e+00> : vector<8xf32>
      %18 = vector.multi_reduction <add>, %17, %cst_12 [1] : vector<8x128xf32> to vector<8xf32>
      %19 = vector.shape_cast %18 : vector<8xf32> to vector<8x1xf32>
      %c0_13 = arith.constant 0 : index
      %c0_14 = arith.constant 0 : index
      %20 = vector.load %arg4[%c0_13, %c0_14] : memref<8x1xf32, #tpu.memory_space<vmem>>, vector<8x1xf32>
      tpu.vector_store %arg4[%c0_13, %c0_14], %19 {strides = array<i32>} : memref<8x1xf32, #tpu.memory_space<vmem>>, vector<8x1xf32>,
    } else {
    }
    return
  }
  func.func @transform_0(%arg0: i32, %arg1: i32) -> i32 {
    %c0_i32 = arith.constant 0 : i32
    %c0_i32_0 = arith.constant 0 : i32
    return %c0_i32 : i32
  }
  func.func @transform_1(%arg0: i32, %arg1: i32) -> (i32, i32) {
    %c0_i32 = arith.constant 0 : i32
    return %arg0, %arg1 : i32, i32
  }
  func.func @transform_2(%arg0: i32, %arg1: i32) -> (i32, i32) {
    %c0_i32 = arith.constant 0 : i32
    %c0_i32_0 = arith.constant 0 : i32
    return %arg0, %c0_i32 : i32, i32
  }
}

</mosaic_0001>

<bundles_post_ra>
// kernel: tpu_custom_call.1
= control target key start
LH: loop header
LB: loop body
LE: loop exit
PB: predicated region body
PF: predicated region fallthrough
CT: control target
= control target key end

     0   :  { %s670_s0 = inlined_call_operand.<no memory space> [shape: f32[1], index: 0, kind: input, shape index: {}]   ;;  %s671_s1 = inlined_call_operand.hbm [shape: f32[16,128], index: 1, kind: input, shape index: {}]   ;;  %s672_s2 = inlined_call_operand.vmem [shape: f32[16,1], index: 2, kind: output, shape index: {}]  }
   0x1   :  { %7 = sst [smem:[#allocation3]] %s670_s0 }
   0x2   :  { %8 = vsyncpa [#allocation5], 0 }
   0x3   :  { %10 = vsyncpa [#allocation5 + $0x1], 0  ;;  %s515_s11 = smov 0   ;;  %s517_s12 = smov 0  }
   0x4   :  { %s519_s13 = smov 0   ;;  %s521_s14 = smov 0  }
   0x5   :  { %s523_s15 = smov 0   ;;  %s525_s16 = smov 0  }
   0x6 LB: > { %s283_s0 = sadd.s32 4294967295, %s490_s16   ;;  %s28_s17 = sadd.s32 1, %s486_s15  ;;  %s490_s16 = sphi %s525_s16, %s16_s16   ;;  %s486_s15 = sphi %s523_s15, %s682_s15   ;;  %s482_s14 = sphi %s521_s14, %s681_s14   ;;  %s478_s13 = sphi %s519_s13, %s680_s13   ;;  %s474_s12 = sphi %s517_s12, %s679_s12   ;;  %s470_s11 = sphi %s515_s11, %s678_s11  }
   0x7   : > { %p30_p0 = scmp.ge.s32.totalorder %s28_s17, 2  ;;  %s58_s18 = sadd.s32 1, %s478_s13 }
   0x8   : > { %p65_p1 = scmp.ne.s32.totalorder %s478_s13, %s474_s12  ;;  %p66_p2 = scmp.eq.s32.totalorder %s490_s16, 0 }
   0x9   : > { %s684_s17 = smov (%p30_p0, %s28_s17), 0  ;;  %p71_p4 = scmp.ne.s32.totalorder %s474_s12, %s470_s11 }
   0xa   : > { %p551_p3 = por %p66_p2, %p65_p1  ;;  %s53_s20 = ssub.s32 %s486_s15, %s684_s17 }
   0xb   : > { %p72_p5 = scmp.eq.s32.totalorder %s283_s0, 0  ;;  %p56_p6 = scmp.eq.s32.totalorder %s53_s20, 0 }
   0xc   : > { %p353_p8 = scmp.lt.s32.totalorder %s490_s16, 2  ;;  %s124_s23 = sand.u32 1, %s478_s13  }
   0xd   : > { %p558_p7 = por %p72_p5, %p71_p4  ;;  %s288_s24 = sshll.u32 %s486_s15, 7 }
   0xe   : > { %s564_s22 = scalar_select %p56_p6, %s478_s13, %s58_s18  }
   0xf   : > { %s287_s25 = sshll.u32 %s124_s23, 3  ;;  %s571_s28 = scalar_lea.hbm %s671_s1, %s288_s24 }
  0x10   : > { %s128_s29 = scalar_lea.vmem [#allocation4], %s287_s25  ;;  %p575_p9 = pnand %p353_p8, %p551_p3 }
  0x11   : > { %s136_s30 = sshll.u32 %s128_s29, 4  ;;  %s125_s4 = scalar_lea.sflag [#allocation5], %s124_s23  ;;  %s579_s30 = int_to_ptr.vmem [resolvable:$true] %s136_s30 }
  0x12   : > { %s410_s5 = scalar_lea.hbm %s571_s28, 128  ;;  %p412_p13 = pneg %p575_p9 }
  0x13   : > { %p411_p12 = scmp.ne.s32.totalorder %s571_s28, %s410_s5  ;;  %s415_s8 = scalar_lea.hbm %s671_s1, 256 }
  0x14   : > { %p416_p2 = scmp.lt.u32.totalorder %s571_s28, %s671_s1  ;;  %p417_p3 = scmp.lt.u32.totalorder %s415_s8, %s410_s5 }
  0x15   : > { %p413_p0 = pnand %p412_p13, %p411_p12  ;;  %p419_p5 = scmp.lt.u32.totalorder %s410_s5, %s571_s28 }
  0x16   : > { %p418_p4 = por %p417_p3, %p416_p2 }
  0x17   : > { %p414_p1 = pneg %p413_p0 }
  0x18   : > { %p420_p6 = por %p419_p5, %p418_p4 }
  0x1a   : > { %p421_p8 = pnand %p420_p6, %p414_p1 }
  0x1c   : > { %424 = shalt.err (!%p421_p8)
}
  0x1d   : > { %s425_s11 = scalar_lea.vmem %s579_s30, 128  ;;  %s492_s0 = smov [#allocation4]  }
  0x1e   : > { %p426_p12 = scmp.ne.s32.totalorder %s579_s30, %s425_s11  ;;  %s430_s18 = sshll.u32 %s492_s0, 4  ;;  %s431_s18 = int_to_ptr.vmem [resolvable:$false] %s430_s18 }
  0x1f   : > { %s432_s19 = scalar_lea.vmem %s431_s18, 256  ;;  %p433_p11 = scmp.lt.s32.totalorder %s579_s30, %s431_s18 }
  0x20   : > { %p428_p0 = pnand %p426_p12, %p412_p13  ;;  %p434_p2 = scmp.lt.s32.totalorder %s432_s19, %s425_s11 }
  0x22   : > { %p429_p10 = pneg %p428_p0  ;;  %p435_p3 = por %p434_p2, %p433_p11 }
  0x24   : > { %p436_p4 = pnand %p435_p3, %p429_p10 }
  0x26   : > { %439 = shalt.err (!%p436_p4)
}
  0x27   : > { %352 = dma.hbm_to_vmem [thread:$0]  (!%p575_p9), %s571_s28, 128, %s579_s30, %s125_s4  }
  0x28   : > { %p676_p1 = scmp.lt.s32.totalorder %s490_s16, 3  ;;  %p677_p5 = scmp.ge.s32.totalorder %s490_s16, 1 }
  0x2a   : > { %p142_p13 = pnand %p677_p5, %p676_p1 }
  0x2b   : > { %s147_s20 = sand.u32 (!%p142_p13), 1, %s474_s12  }
  0x2c   : > { %145 = sbr.rel (%p142_p13) target bundleno = 261 (0x105), region = 28  ;;  %s290_s23 = sshll.u32 (!%p142_p13), %s147_s20, 3 }
  0x2d   : > { %s148_s24 = scalar_lea.sflag (!%p142_p13), [#allocation5], %s147_s20  ;;  %s151_s25 = scalar_lea.vmem (!%p142_p13), [#allocation4], %s290_s23 }
  0x33   : > { %465 = dma.done.wait (%p558_p7), %s148_s24, 128  }
  0x34   : > { %467 = vsyncadd (%p558_p7), %s148_s24, 4294967168  ;;  %p171_p10 = scmp.lt.s32.totalorder %s482_s14, 1  ;;  %s175_s26 = sld [smem:[#allocation3]]  ;;  %v493_v0 = vmov 0.0   ;;  %v624_v1 = vld [vmem:[%s151_s25] sm:$0xff] }
  0x35   : > { %184 = vst [vmem:[#allocation2] sm:$0xff] %v493_v0  ;;  %s494_s4 = smov 0.0  }
  0x36   : > { %s686_s14 = smov (!%p171_p10, %s482_s14), 1 }
  0x37   : > { %s291_s27 = sshll.u32 %s686_s14, 3 }
  0x38   : > { %s622_s30 = scalar_lea.vmem %s672_s2, %s291_s27 }
  0x3a   : > { %s292_s3 = sadd.f32 -1e-07, %s175_s26 }
  0x3c   : > { %s177_s5 = smax.f32 %s494_s4, %s292_s3 }
  0x3d   : > { %s178_s21 = sadd.f32 1e-07, %s177_s5 }
  0x3f   : > { %p179_p7 = scmp.eq.f32.partialorder %s178_s21, 2.0 }
  0x40   : > { %v189_v2 = vmul.f32 (%p179_p7), %v624_v1, %v624_v1  ;;  %v190_v3 = vld [vmem:[#allocation2] sm:$0xff] (%p179_p7) }
  0x41   : > { %188 = sbr.rel (!%p179_p7) target bundleno = 72 (0x48), region = 40 }
  0x42   : > { %v191_v4 = vadd.f32 (%p179_p7), %v190_v3, %v189_v2 }
  0x44   : > { %192 = vst [vmem:[#allocation2] sm:$0xff] (%p179_p7), %v191_v4 }
  0x48 PF: > { %195 = sbr.rel (%p179_p7) target bundleno = 111 (0x6f), region = 44  ;;  %v196_v5 = vstv (!%p179_p7), %s178_s21  ;;  %v295_v6 = vand.u32 (!%p179_p7), 2147483647, %v624_v1  ;;  %vm316_vm4 = vcmp.eq.f32.partialorder (!%p179_p7), %v624_v1, 0  ;;  %vm315_vm8 = vcmp.lt.f32.partialorder (!%p179_p7), %v624_v1, 0 }
  0x49   : > { %v299_v7 = vand.u32 (!%p179_p7), 2147483647, %v196_v5  ;;  %v304_v9 = vtrunc.f32 (!%p179_p7), %v196_v5  ;;  %vm303_vm3 = vcmp.lt.f32.partialorder (!%p179_p7), %v196_v5, 0  ;;  %v495_v14 = vmov (!%p179_p7), 2139095040  }
  0x4a   : > { %406 = vlog2.f32 (!%p179_p7), %v295_v6  ;;  %vm319_vm5 = vcmp.gt.f32.partialorder (!%p179_p7), %v295_v6, 1065353216  ;;  %vm328_vm9 = vmand (!%p179_p7), %vm303_vm3, %vm316_vm4  ;;  %v335_v15 = vsel (!%p179_p7), %vm303_vm3, 0, %v495_v14  ;;  %v496_v17 = vmov (!%p179_p7), 0  }
  0x4b   : > { %v308_v8 = vtrunc.f32 (!%p179_p7), %v299_v7  ;;  %vm300_vm0 = vcmp.eq.f32.partialorder (!%p179_p7), %v299_v7, 2139095040  ;;  %vm305_vm1 = vcmp.ne.f32.partialorder (!%p179_p7), %v196_v5, %v304_v9  ;;  %vm329_vm10 = vmxor (!%p179_p7), %vm303_vm3, %vm319_vm5  ;;  %vm307_vm11 = vcmp.lt.f32.partialorder (!%p179_p7), %v299_v7, 1266679808  ;;  %v198_v31 = vld [vmem:[#allocation2] sm:$0xff] (!%p179_p7) }
  0x4c   : > { %vm306_vm2 = vmor (!%p179_p7), %vm305_vm1, %vm300_vm0  ;;  %v336_v16 = vxor.u32 (!%p179_p7), 2147483648, %v335_v15  ;;  %vm318_vm1 = vcmp.lt.s32.totalorder (!%p179_p7), %v624_v1, 0  ;;  %v323_v18 = vsel (!%p179_p7), %vm303_vm3, 2139095040, %v496_v17  ;;  %vm332_vm5 = vcmp.eq.f32.partialorder (!%p179_p7), %v624_v1, 3212836864 }
  0x4d   : > { %v309_v10 = vcvt.f32.s32 (!%p179_p7), %v308_v8  ;;  %vm312_vm7 = vmneg (!%p179_p7), %vm306_vm2  ;;  %vm320_vm3 = vcmp.eq.f32.partialorder (!%p179_p7), %v295_v6, 2139095040 }
  0x4e   : > { %vm321_vm13 = vmand (!%p179_p7), %vm315_vm8, %vm306_vm2  ;;  %vm340_vm2 = vcmp.ne.f32.partialorder (!%p179_p7), %v624_v1, %v624_v1 }
  0x4f   : > { %v310_v13 = vand.u32 1, %v309_v10  ;;  %vm330_vm14 = vmor %vm328_vm9, %vm329_vm10  ;;  %vm301_vm9 = vcmp.eq.f32.partialorder %v196_v5, 0  ;;  %vm317_vm10 = vcmp.eq.f32.partialorder %v624_v1, 1065353216 }
  0x50   : > { %v331_v20 = vsel %vm330_vm14, 2139095040, %v496_v17 }
  0x51   : > { %vm311_vm6 = vcmp.eq.s32.totalorder %v310_v13, 1  ;;  %v333_v25 = vsel %vm332_vm5, 1065353216, %v331_v20 }
  0x52   : > { %vm313_vm12 = vmand %vm311_vm6, %vm312_vm7  ;;  %vm341_vm7 = vcmp.ne.f32.partialorder %v196_v5, %v196_v5 }
  0x53   : > { %vm314_vm15 = vmand %vm307_vm11, %vm313_vm12 }
  0x54   : > { %v407_v11 = vpop.eup %406  ;;  %v337_v22 = vsel %vm314_vm15, %v336_v16, %v335_v15  ;;  %vm325_vm6 = vmand %vm318_vm1, %vm314_vm15 }
  0x55   : > { %v297_v12 = vmul.f32 %v407_v11, %v196_v5  ;;  %v338_v26 = vsel %vm315_vm8, %v337_v22, %v335_v15  ;;  %vm342_vm11 = vmor %vm340_vm2, %vm341_vm7 }
  0x56   : > { %vm344_vm12 = vmor %vm317_vm10, %vm301_vm9 }
  0x57   : > { %408 = vpow2.f32 %v297_v12 }
  0x61   : > { %v409_v19 = vpop.eup %408 }
  0x62   : > { %v322_v21 = vsel %vm321_vm13, 2143289344, %v409_v19 }
  0x63   : > { %v324_v23 = vsel %vm316_vm4, %v323_v18, %v322_v21  ;;  %vm302_vm4 = vcmp.eq.f32.partialorder %v196_v5, 1065353216 }
  0x64   : > { %v326_v24 = vxor.u32 2147483648, %v324_v23 }
  0x66   : > { %v327_v27 = vsel %vm325_vm6, %v326_v24, %v324_v23 }
  0x67   : > { %v334_v28 = vsel %vm300_vm0, %v333_v25, %v327_v27 }
  0x68   : > { %v339_v29 = vsel %vm320_vm3, %v338_v26, %v334_v28 }
  0x69   : > { %v343_v30 = vsel %vm342_vm11, 2143289344, %v339_v29 }
  0x6a   : > { %v345_v32 = vsel %vm344_vm12, 1065353216, %v343_v30 }
  0x6b   : > { %v346_v33 = vsel %vm302_vm4, %v624_v1, %v345_v32 }
  0x6c   : > { %v199_v34 = vadd.f32 %v346_v33, %v198_v31 }
  0x6e   : > { %200 = vst [vmem:[#allocation2] sm:$0xff] %v199_v34 }
  0x6f PF: > { %vm207_vm13 = vcmask 7168  }
  0x75   : > { %v204_v35 = vld [vmem:[#allocation2] sm:$0xff] }
  0x76   : > { %205 = vadd.xlane.f32.xlu0 %v204_v35 }
 0x103   : > { %v206_v36 = vpop.xlane.xlu0 %205 }
 0x104   : > { %208 = vst.msk [vmem:[%s622_s30] sm:$0xff] %vm207_vm13, %v206_v36 }
 0x105 PF: > { %s16_s16 = sadd.s32 1, %s490_s16   ;;  %s678_s11 = smov %s474_s12 }
 0x106   : > { %p13_p9 = scmp.ge.s32.totalorder %s16_s16, 4   ;;  %s679_s12 = smov %s478_s13 }
 0x107   : > { %s680_s13 = smov %s564_s22  ;;  %s681_s14 = smov %s486_s15 }
 0x108   : > { %s682_s15 = smov %s684_s17  ;;  %15 = sbr.rel (!%p13_p9) target bundleno = 6 (0x6), region = 84 }
 0x10f   :  { %228 = vsyncpa [#allocation5], 1 }
 0x110   :  { %230 = vsyncpa [#allocation5 + $0x1], 1 }

</bundles_post_ra>
